<compile_context>
chip_gen: v6e
topology: v6e:2x2x1
jax: 0.10.0
libtpu: 0.0.40
codegen_flags: <defaults>
</compile_context>

<pallas_src>
import functools
import math

import jax
import jax.numpy as jnp
from jax.experimental import pallas as pl
from jax.experimental.pallas import tpu as pltpu


def _erf_poly(z):
    """erf via Abramowitz & Stegun 7.1.26 (|abs error| < ~1.5e-7 + approx-rcp).

    Uses exp / mul / add plus an EUP approximate reciprocal; lax.erf has no
    guaranteed Pallas-TPU lowering rule.
    """
    a1, a2, a3, a4, a5 = (0.254829592, -0.284496736, 1.421413741,
                          -1.453152027, 1.061405429)
    p = 0.3275911
    az = jnp.abs(z)
    t = pl.reciprocal(1.0 + p * az, approx=True)      # EUP slot, ~free
    poly = ((((a5 * t + a4) * t + a3) * t + a2) * t + a1) * t
    y = 1.0 - poly * jnp.exp(-az * az)                # exp on EUP as well
    return jnp.where(z >= 0.0, y, -y)


def _apply_activation(y, activation):
    if activation == "gelu":
        # BERT "exact" gelu: x * 0.5 * (1 + erf(x / sqrt(2)))
        return 0.5 * y * (1.0 + _erf_poly(y * (1.0 / math.sqrt(2.0))))
    elif activation == "relu":
        return jnp.maximum(y, 0.0)
    elif activation == "swish":
        return y * jax.nn.sigmoid(y)
    else:
        raise ValueError(f"unsupported activation: {activation}")


def _bert_intermediate_kernel(x_ref, wt_ref, b_ref, o_ref, *, activation):
    # x_ref: (tm, H) compute dtype; wt_ref: (H, tn_or_I) compute dtype
    # b_ref: (1, tn_or_I) f32;       o_ref: (tm, tn_or_I) f32
    y = jnp.dot(x_ref[...], wt_ref[...],
                preferred_element_type=jnp.float32)   # MXU, f32 accumulation
    y = y + b_ref[...]                                # f32 epilogue
    y = _apply_activation(y, activation)
    o_ref[...] = y.astype(o_ref.dtype)


def prepare_bert_intermediate_params(weight, bias, *,
                                     compute_dtype=jnp.bfloat16):
    """One-time param prep (hoisted out of the forward pass).

    weight: (I, H) PyTorch (out, in) layout; bias: (I,).
    Returns (wt, b2): wt = (H, I) transposed + cast to compute dtype,
    b2 = (1, I) f32 bias for the f32 epilogue.
    """
    wt = jnp.asarray(weight).T.astype(compute_dtype)          # (H, I)
    b2 = jnp.asarray(bias, dtype=jnp.float32).reshape(1, -1)  # (1, I)
    return wt, b2


def bert_intermediate(hidden_states, wt, b2, *,
                      activation="gelu",
                      tm=512, tn=1024,
                      vmem_limit_bytes=64 * 1024 * 1024,
                      force_column_tiling=False):
    """hidden_states: (B, S, H) f32; wt: (H, I) pre-transposed; b2: (1, I) f32."""
    B, S, H = hidden_states.shape
    Hw, I = wt.shape
    assert Hw == H and b2.shape == (1, I)

    compute_dtype = wt.dtype
    M = B * S
    # HBM-side cast (no in-kernel per-step casts; halves kernel-side x DMA).
    x = hidden_states.reshape(M, H).astype(compute_dtype)

    tm = min(tm, M)
    itemsize = jnp.dtype(compute_dtype).itemsize
    # Rough double-buffered VMEM footprint of the weight-resident layout.
    resident_bytes = 2 * (H * I * itemsize        # resident weight
                          + tm * H * itemsize     # x row tile
                          + tm * I * 4            # f32 output tile
                          + I * 4)                # bias
    use_resident = (not force_column_tiling) and resident_bytes <= vmem_limit_bytes

    kernel = functools.partial(_bert_intermediate_kernel, activation=activation)
    out_shape = jax.ShapeDtypeStruct((M, I), jnp.float32)

    if use_resident:
        # Path A: full weight resident in VMEM, 1-D grid over row blocks.
        grid_spec = pltpu.PrefetchScalarGridSpec(
            num_scalar_prefetch=0,
            grid=(pl.cdiv(M, tm),),
            in_specs=[
                pl.BlockSpec((tm, H), lambda i: (i, 0)),
                pl.BlockSpec((H, I), lambda i: (0, 0)),   # DMA'd once, resident
                pl.BlockSpec((1, I), lambda i: (0, 0)),   # resident bias
            ],
            out_specs=pl.BlockSpec((tm, I), lambda i: (i, 0)),
        )
        dim_sem = ("parallel",)
    else:
        # Path B: column-tiled fallback for weights too large for VMEM.
        tn = min(tn, I)
        grid_spec = pltpu.PrefetchScalarGridSpec(
            num_scalar_prefetch=0,
            grid=(pl.cdiv(M, tm), pl.cdiv(I, tn)),
            in_specs=[
                # x row block constant along inner j axis -> no re-DMA per j.
                pl.BlockSpec((tm, H), lambda i, j: (i, 0)),
                pl.BlockSpec((H, tn), lambda i, j: (0, j)),
                pl.BlockSpec((1, tn), lambda i, j: (0, j)),
            ],
            out_specs=pl.BlockSpec((tm, tn), lambda i, j: (i, j)),
        )
        dim_sem = ("parallel", "parallel")

    out = pl.pallas_call(
        kernel,
        out_shape=out_shape,
        grid_spec=grid_spec,
        compiler_params=pltpu.CompilerParams(
            dimension_semantics=dim_sem,
            vmem_limit_bytes=vmem_limit_bytes),
    )(x, wt, b2)

    return out.reshape(B, S, I)


def reference_bert_intermediate(hidden_states, weight, bias, activation="gelu"):
    """Pure-JAX reference mirroring the PyTorch module."""
    y = hidden_states @ weight.T + bias
    if activation == "gelu":
        return 0.5 * y * (1.0 + jax.lax.erf(y / math.sqrt(2.0)))
    elif activation == "relu":
        return jnp.maximum(y, 0.0)
    elif activation == "swish":
        return y * jax.nn.sigmoid(y)
    raise ValueError(activation)


if __name__ == "__main__":
    # Small BERT-like shapes: hidden=32, intermediate=4*hidden=128 (lane-dense).
    B, S, H, I = 2, 8, 32, 128

    key = jax.random.PRNGKey(0)
    kx, kw, kb = jax.random.split(key, 3)

    x = jax.random.normal(kx, (B, S, H), dtype=jnp.float32)

    # PyTorch Linear-style uniform init, bound = 1/sqrt(fan_in).
    bound = 1.0 / math.sqrt(H)
    w = jax.random.uniform(kw, (I, H), jnp.float32, -bound, bound)
    b = jax.random.uniform(kb, (I,), jnp.float32, -bound, bound)

    ref = reference_bert_intermediate(x, w, b, activation="gelu")

    # Default fast path: bf16 MXU operands + weight-resident layout.
    wt_bf16, b2 = prepare_bert_intermediate_params(w, b, compute_dtype=jnp.bfloat16)
    out_bf16 = jax.block_until_ready(
        bert_intermediate(x, wt_bf16, b2, activation="gelu"))
    assert out_bf16.shape == (B, S, I)
    assert jnp.allclose(out_bf16, ref, atol=5e-2, rtol=5e-2), "bf16 path mismatch"

    # f32 operands (tight-tolerance check of the same kernel, resident path).
    wt_f32, _ = prepare_bert_intermediate_params(w, b, compute_dtype=jnp.float32)
    out_f32 = jax.block_until_ready(
        bert_intermediate(x, wt_f32, b2, activation="gelu"))
    assert jnp.allclose(out_f32, ref, atol=5e-3, rtol=5e-3), "f32 resident mismatch"

    # Exercise the column-tiled fallback path as well.
    out_tiled = jax.block_until_ready(
        bert_intermediate(x, wt_f32, b2, activation="gelu",
                          force_column_tiling=True))
    assert jnp.allclose(out_tiled, ref, atol=5e-3, rtol=5e-3), "f32 tiled mismatch"

    print("KERNEL_OK")
</pallas_src>

<mosaic_0001>
module attributes {stable_mosaic.version = 11 : i64} {
  func.func @_bert_intermediate_kernel(%arg0: i32, %arg1: memref<16x32xbf16, #tpu.memory_space<vmem>>, %arg2: memref<32x128xbf16, #tpu.memory_space<vmem>>, %arg3: memref<1x128xf32, #tpu.memory_space<vmem>>, %arg4: memref<16x128xf32, #tpu.memory_space<vmem>>) attributes {dimension_semantics = [#tpu.dimension_semantics<parallel>], iteration_bounds = array<i64: 1>, scalar_prefetch = 0 : i64, scratch_operands = 0 : i64, tpu.core_type = #tpu.core_type<tc>, window_params = [{transform_indices = @transform_0, window_bounds = array<i64: 16, 32>}, {pipeline_mode = #tpu.pipeline_mode<synchronous>, transform_indices = @transform_1, window_bounds = array<i64: 32, 128>}, {pipeline_mode = #tpu.pipeline_mode<synchronous>, transform_indices = @transform_2, window_bounds = array<i64: 1, 128>}, {transform_indices = @transform_3, window_bounds = array<i64: 16, 128>}]} {
    %c0 = arith.constant 0 : index
    %c0_0 = arith.constant 0 : index
    %0 = vector.load %arg1[%c0, %c0_0] : memref<16x32xbf16, #tpu.memory_space<vmem>>, vector<16x32xbf16>
    %c0_1 = arith.constant 0 : index
    %c0_2 = arith.constant 0 : index
    %1 = vector.load %arg2[%c0_1, %c0_2] : memref<32x128xbf16, #tpu.memory_space<vmem>>, vector<32x128xbf16>
    %cst = arith.constant dense<0.000000e+00> : vector<16x128xf32>
    %2 = tpu.matmul %0, %1, %cst {dimension_numbers = #tpu.dot_dimension_numbers<[1], [0], [0], [1], [0, 0, 1, 1], [], []>} : vector<16x32xbf16>, vector<32x128xbf16>, vector<16x128xf32> -> vector<16x128xf32>
    %c0_3 = arith.constant 0 : index
    %c0_4 = arith.constant 0 : index
    %3 = vector.load %arg3[%c0_3, %c0_4] : memref<1x128xf32, #tpu.memory_space<vmem>>, vector<1x128xf32>
    %4 = vector.broadcast %3 : vector<1x128xf32> to vector<16x128xf32>
    %5 = arith.addf %2, %4 : vector<16x128xf32>
    %cst_5 = arith.constant 5.000000e-01 : f32
    %6 = vector.broadcast %cst_5 : f32 to vector<16x128xf32>
    %7 = arith.mulf %6, %5 : vector<16x128xf32>
    %cst_6 = arith.constant 0.707106769 : f32
    %8 = vector.broadcast %cst_6 : f32 to vector<16x128xf32>
    %9 = arith.mulf %5, %8 : vector<16x128xf32>
    %10 = math.absf %9 : vector<16x128xf32>
    %cst_7 = arith.constant 0.327591091 : f32
    %11 = vector.broadcast %cst_7 : f32 to vector<16x128xf32>
    %12 = arith.mulf %11, %10 : vector<16x128xf32>
    %cst_8 = arith.constant 1.000000e+00 : f32
    %13 = vector.broadcast %cst_8 : f32 to vector<16x128xf32>
    %14 = arith.addf %13, %12 : vector<16x128xf32>
    %15 = tpu.reciprocal %14 {approx = true} : vector<16x128xf32> -> vector<16x128xf32>
    %cst_9 = arith.constant 1.06140542 : f32
    %16 = vector.broadcast %cst_9 : f32 to vector<16x128xf32>
    %17 = arith.mulf %16, %15 : vector<16x128xf32>
    %cst_10 = arith.constant -1.45315206 : f32
    %18 = vector.broadcast %cst_10 : f32 to vector<16x128xf32>
    %19 = arith.addf %17, %18 : vector<16x128xf32>
    %20 = arith.mulf %19, %15 : vector<16x128xf32>
    %cst_11 = arith.constant 1.42141378 : f32
    %21 = vector.broadcast %cst_11 : f32 to vector<16x128xf32>
    %22 = arith.addf %20, %21 : vector<16x128xf32>
    %23 = arith.mulf %22, %15 : vector<16x128xf32>
    %cst_12 = arith.constant -0.284496725 : f32
    %24 = vector.broadcast %cst_12 : f32 to vector<16x128xf32>
    %25 = arith.addf %23, %24 : vector<16x128xf32>
    %26 = arith.mulf %25, %15 : vector<16x128xf32>
    %cst_13 = arith.constant 0.254829586 : f32
    %27 = vector.broadcast %cst_13 : f32 to vector<16x128xf32>
    %28 = arith.addf %26, %27 : vector<16x128xf32>
    %29 = arith.mulf %28, %15 : vector<16x128xf32>
    %cst_14 = arith.constant 0.000000e+00 : f32
    %30 = vector.broadcast %cst_14 : f32 to vector<16x128xf32>
    %31 = arith.subf %30, %10 : vector<16x128xf32>
    %32 = arith.mulf %31, %10 : vector<16x128xf32>
    %33 = math.exp %32 : vector<16x128xf32>
    %34 = arith.mulf %29, %33 : vector<16x128xf32>
    %cst_15 = arith.constant 1.000000e+00 : f32
    %35 = vector.broadcast %cst_15 : f32 to vector<16x128xf32>
    %36 = arith.subf %35, %34 : vector<16x128xf32>
    %cst_16 = arith.constant 0.000000e+00 : f32
    %37 = vector.broadcast %cst_16 : f32 to vector<16x128xf32>
    %38 = arith.cmpf oge, %9, %37 : vector<16x128xf32>
    %cst_17 = arith.constant 0.000000e+00 : f32
    %39 = vector.broadcast %cst_17 : f32 to vector<16x128xf32>
    %40 = arith.subf %39, %36 : vector<16x128xf32>
    %41 = arith.select %38, %36, %40 : vector<16x128xi1>, vector<16x128xf32>
    %cst_18 = arith.constant 1.000000e+00 : f32
    %42 = vector.broadcast %cst_18 : f32 to vector<16x128xf32>
    %43 = arith.addf %42, %41 : vector<16x128xf32>
    %44 = arith.mulf %7, %43 : vector<16x128xf32>
    %c0_19 = arith.constant 0 : index
    %c0_20 = arith.constant 0 : index
    %45 = vector.load %arg4[%c0_19, %c0_20] : memref<16x128xf32, #tpu.memory_space<vmem>>, vector<16x128xf32>
    tpu.vector_store %arg4[%c0_19, %c0_20], %44 {strides = array<i32>} : memref<16x128xf32, #tpu.memory_space<vmem>>, vector<16x128xf32>,
    return
  }
  func.func @transform_0(%arg0: i32) -> (i32, i32) {
    %c0_i32 = arith.constant 0 : i32
    %c0_i32_0 = arith.constant 0 : i32
    return %arg0, %c0_i32 : i32, i32
  }
  func.func @transform_1(%arg0: i32) -> (i32, i32) {
    %c0_i32 = arith.constant 0 : i32
    %c0_i32_0 = arith.constant 0 : i32
    %c0_i32_1 = arith.constant 0 : i32
    return %c0_i32, %c0_i32_0 : i32, i32
  }
  func.func @transform_2(%arg0: i32) -> (i32, i32) {
    %c0_i32 = arith.constant 0 : i32
    %c0_i32_0 = arith.constant 0 : i32
    %c0_i32_1 = arith.constant 0 : i32
    return %c0_i32, %c0_i32_0 : i32, i32
  }
  func.func @transform_3(%arg0: i32) -> (i32, i32) {
    %c0_i32 = arith.constant 0 : i32
    %c0_i32_0 = arith.constant 0 : i32
    return %arg0, %c0_i32 : i32, i32
  }
}

</mosaic_0001>

<bundles_post_ra>
// kernel: tpu_custom_call.1
= control target key start
LH: loop header
LB: loop body
LE: loop exit
PB: predicated region body
PF: predicated region fallthrough
CT: control target
= control target key end

     0   :  { %8 = vsyncpa [#allocation3], 0  ;;  %s334_s0 = inlined_call_operand.hbm [shape: bf16[16,32], index: 0, kind: input, shape index: {}]   ;;  %s335_s1 = inlined_call_operand.hbm [shape: bf16[32,128], index: 1, kind: input, shape index: {}]   ;;  %s336_s2 = inlined_call_operand.vmem [shape: f32[1,128], index: 2, kind: input, shape index: {}]   ;;  %s337_s3 = inlined_call_operand.hbm [shape: f32[16,128], index: 3, kind: output, shape index: {}]  }
   0x1   :  { %9 = vsyncpa [#allocation6], 0 }
   0x2   :  { %10 = vsyncpa [#allocation4], 0  ;;  %s293_s12 = smov [#allocation2]  }
   0x3   :  { %s16_s13 = sshll.u32 %s293_s12, 4  ;;  %s17_s13 = int_to_ptr.vmem [resolvable:$true] %s16_s13 }
   0x4   :  { %s235_s14 = scalar_lea.vmem %s17_s13, 128  ;;  %p240_p1 = scmp.lt.s32.totalorder %s17_s13, %s17_s13 }
   0x5   :  { %p236_p0 = scmp.ne.s32.totalorder %s17_s13, %s235_s14  ;;  %p241_p2 = scmp.lt.s32.totalorder %s235_s14, %s235_s14 }
   0x7   :  { %p242_p3 = por %p241_p2, %p240_p1 }
   0x9   :  { %p243_p4 = pnand %p242_p3, %p236_p0 }
   0xb   :  { %246 = shalt.err (!%p243_p4)
}
   0xc   :  { %s294_s15 = smov 64   ;;  %s295_s16 = smov 4  }
   0xd   :  { %22 = dma.hbm_to_vmem [thread:$0]  %s334_s0, 128, %s17_s13, [#allocation3], %s294_s15, %s294_s15, %s295_s16  }
   0xe   :  { %s296_s19 = smov [#allocation5]  }
   0xf   :  { %s28_s20 = sshll.u32 %s296_s19, 4  ;;  %s29_s20 = int_to_ptr.vmem [resolvable:$true] %s28_s20 }
  0x10   :  { %s255_s21 = scalar_lea.vmem %s29_s20, 256  ;;  %p260_p6 = scmp.lt.s32.totalorder %s29_s20, %s29_s20 }
  0x11   :  { %p256_p5 = scmp.ne.s32.totalorder %s29_s20, %s255_s21  ;;  %p261_p7 = scmp.lt.s32.totalorder %s255_s21, %s255_s21 }
  0x13   :  { %p262_p8 = por %p261_p7, %p260_p6 }
  0x15   :  { %p263_p9 = pnand %p262_p8, %p256_p5 }
  0x17   :  { %266 = shalt.err (!%p263_p9)
}
  0x18   :  { %34 = dma.hbm_to_vmem [thread:$0]  %s335_s1, 256, %s29_s20, [#allocation6], %s294_s15, %s294_s15, %s295_s16  }
  0x19   :  { %287 = dma.done.wait [#allocation3], 128  }
  0x1a   :  { %288 = vsyncadd [#allocation3], 4294967168 }
  0x1b   :  { %289 = dma.done.wait [#allocation6], 256  }
  0x1c   :  { %290 = vsyncadd [#allocation6], 4294967040  ;;  %v297_v0 = vmov 0.0   ;;  %vm298_vm0 = vmmov 0   ;;  %v216_v1 = vld [vmem:[#allocation5 + $0x8] sm:$0xff]   ;;  %v217_v2 = vld [vmem:[#allocation5] sm:$0xff]  }
  0x1d   :  { %199 = vmatprep.subr.bf16.mxu0 %v297_v0  ;;  %203 = vmatprep.mubr.msk.bf16.mxu0 %vm298_vm0, %v297_v0  ;;  %v218_v3 = vld [vmem:[#allocation2] sm:$0xff]   ;;  %vm74_vm1 = vcmask 261120   ;;  %s299_s1 = smov [#allocation7]  }
  0x1e   :  { %200 = vmatpush3.bf16.msra.mxu0 %v216_v1  ;;  %v191_v4 = vld [vmem:[%s336_s2] ss:$0 sm:$0xff]  ;;  %s178_s2 = sshll.u32 %s299_s1, 4  ;;  %s179_s2 = int_to_ptr.vmem [resolvable:$true] %s178_s2 }
  0x1f   :  { %201 = vmatprep.subr.bf16.mxu0 %v297_v0  ;;  %s267_s25 = scalar_lea.vmem %s179_s2, 256  ;;  %p272_p11 = scmp.lt.s32.totalorder %s179_s2, %s179_s2 }
  0x20   :  { %p268_p10 = scmp.ne.s32.totalorder %s179_s2, %s267_s25  ;;  %p273_p12 = scmp.lt.s32.totalorder %s267_s25, %s267_s25 }
  0x22   :  { %202 = vmatpush3.bf16.msra.mxu0 %v217_v2  ;;  %p274_p13 = por %p273_p12, %p272_p11 }
  0x24   :  { %p275_p0 = pnand %p274_p13, %p268_p10 }
  0x25   :  { %204 = vmatmul.mubr.msk.bf16.vlgmr.msra.gmra.mxu0 %vm74_vm1, %v218_v3 }
  0xe5   :  { %v112_v5 = vpop.f32.mrf.mxu0 }
  0xe6   :  { %v113_v6 = vadd.f32 %v191_v4, %v112_v5 }
  0xe7   :  { %v205_v7 = vpop.f32.mrf.mxu0 }
  0xe8   :  { %v121_v8 = vmul.f32 0.70710677, %v113_v6  ;;  %v119_v53 = vmul.f32 0.5, %v113_v6 }
  0xe9   :  { %v115_v9 = vpop.f32.mrf.mxu0 }
  0xea   :  { %v123_v10 = vand.u32 2147483647, %v121_v8  ;;  %v116_v11 = vadd.f32 %v191_v4, %v115_v9  ;;  %vm161_vm2 = vcmp.ge.f32.partialorder %v121_v8, 0.0 }
  0xeb   :  { %v206_v12 = vpop.f32.mrf.mxu0 }
  0xec   :  { %v125_v13 = vmul.f32 0.3275911, %v123_v10  ;;  %v122_v14 = vmul.f32 0.70710677, %v116_v11  ;;  %v149_v19 = vsub.f32 0.0, %v123_v10  ;;  %v120_v58 = vmul.f32 0.5, %v116_v11 }
  0xee   :  { %v127_v15 = vadd.f32 1.0, %v125_v13  ;;  %v124_v16 = vand.u32 2147483647, %v122_v14  ;;  %v151_v20 = vmul.f32 %v149_v19, %v123_v10  ;;  %vm162_vm3 = vcmp.ge.f32.partialorder %v122_v14, 0.0 }
  0xf0   :  { %219 = vrcp.f32 %v127_v15  ;;  %v126_v17 = vmul.f32 0.3275911, %v124_v16  ;;  %v150_v21 = vsub.f32 0.0, %v124_v16  ;;  %v153_v24 = vmul.f32 1.442695, %v151_v20 }
  0xf2   :  { %v128_v18 = vadd.f32 1.0, %v126_v17  ;;  %v152_v25 = vmul.f32 %v150_v21, %v124_v16 }
  0xf4   :  { %221 = vrcp.f32 %v128_v18  ;;  %v155_v30 = vmul.f32 1.442695, %v152_v25 }
  0xf5   :  { %223 = vpow2.f32 %v153_v24 }
  0xf6   :  { %225 = vpow2.f32 %v155_v30 }
  0xfd   :  { %v220_v22 = vpop.eup %219 }
  0xfe   :  { %v131_v23 = vmul.f32 1.0614054, %v220_v22 }
 0x100   :  { %v133_v26 = vadd.f32 -1.4531521, %v131_v23 }
 0x101   :  { %v222_v27 = vpop.eup %221 }
 0x102   :  { %v135_v28 = vmul.f32 %v220_v22, %v133_v26  ;;  %v132_v29 = vmul.f32 1.0614054, %v222_v27  ;;  %v224_v43 = vpop.eup %223 }
 0x103   :  { %v226_v48 = vpop.eup %225 }
 0x104   :  { %v137_v31 = vadd.f32 1.4214138, %v135_v28  ;;  %v134_v32 = vadd.f32 -1.4531521, %v132_v29 }
 0x106   :  { %v139_v33 = vmul.f32 %v220_v22, %v137_v31  ;;  %v136_v34 = vmul.f32 %v222_v27, %v134_v32 }
 0x108   :  { %v141_v35 = vadd.f32 -0.28449672, %v139_v33  ;;  %v138_v36 = vadd.f32 1.4214138, %v136_v34 }
 0x10a   :  { %v143_v37 = vmul.f32 %v220_v22, %v141_v35  ;;  %v140_v38 = vmul.f32 %v222_v27, %v138_v36 }
 0x10c   :  { %v145_v39 = vadd.f32 0.2548296, %v143_v37  ;;  %v142_v40 = vadd.f32 -0.28449672, %v140_v38 }
 0x10e   :  { %v147_v41 = vmul.f32 %v220_v22, %v145_v39  ;;  %v144_v42 = vmul.f32 %v222_v27, %v142_v40 }
 0x110   :  { %v157_v44 = vmul.f32 %v224_v43, %v147_v41  ;;  %v146_v45 = vadd.f32 0.2548296, %v144_v42 }
 0x112   :  { %v159_v46 = vsub.f32 1.0, %v157_v44  ;;  %v148_v47 = vmul.f32 %v222_v27, %v146_v45 }
 0x114   :  { %v163_v49 = vsub.f32 0.0, %v159_v46  ;;  %v158_v50 = vmul.f32 %v226_v48, %v148_v47 }
 0x116   :  { %v165_v51 = vsel %vm161_vm2, %v159_v46, %v163_v49  ;;  %v160_v52 = vsub.f32 1.0, %v158_v50 }
 0x117   :  { %v167_v54 = vadd.f32 1.0, %v165_v51 }
 0x118   :  { %v164_v55 = vsub.f32 0.0, %v160_v52 }
 0x119   :  { %v169_v56 = vmul.f32 %v167_v54, %v119_v53 }
 0x11a   :  { %v166_v57 = vsel %vm162_vm3, %v160_v52, %v164_v55 }
 0x11b   :  { %171 = vst [vmem:[#allocation7] sm:$0xff] %v169_v56  ;;  %v168_v59 = vadd.f32 1.0, %v166_v57 }
 0x11d   :  { %v170_v60 = vmul.f32 %v168_v59, %v120_v58 }
 0x11f   :  { %172 = vst [vmem:[#allocation7 + $0x8] sm:$0xff] %v170_v60 }
 0x120   :  { %278 = shalt.err (!%p275_p0)
}
 0x121   :  { %s300_s26 = smov 128   ;;  %s301_s27 = smov 8  }
 0x122   :  { %184 = dma.vmem_to_hbm [thread:$0]  %s179_s2, 256, %s337_s3, [#allocation4], %s300_s26, %s300_s26, %s301_s27  }
 0x123   :  { %291 = dma.done.wait [#allocation4], 256  }
 0x124   :  { %292 = vsyncadd [#allocation4], 4294967040 }
 0x125   :  { %188 = vsyncpa [#allocation3], 1 }
 0x126   :  { %189 = vsyncpa [#allocation6], 1 }
 0x127   :  { %190 = vsyncpa [#allocation4], 1 }

</bundles_post_ra>
